<compile_context>
chip_gen: v5e
topology: v5e:2x2
jax: 0.10.0
libtpu: 0.0.40
codegen_flags: <defaults>
</compile_context>

<pallas_src>
import jax
import jax.numpy as jnp
from jax.experimental import pallas as pl
from jax.experimental.pallas import tpu as pltpu


def rnn_kernel(x_ref, wslab_ref, oslab_ref, out_ref):
    # x_ref:     (T, B, I)      input signal, time-major
    # wslab_ref: (I + H + 1, H) rows [0:I]=W_ih, [I:I+H]=W_hh, [I+H]=b_ih+b_hh
    # oslab_ref: (H + 1, O)     rows [0:H]=W_ho, [H]=b_o
    # out_ref:   (B, O)
    T, B, I = x_ref.shape
    H = wslab_ref.shape[1]

    # Parameter slabs: two DMA descriptors total.  Row offsets I, I+H, H are all
    # multiples of 8 at these shapes, so each slice is a full sublane-tile window.
    wih = wslab_ref[0:I, :]               # (I, H)
    whh = wslab_ref[I:I + H, :]           # (H, H)  — loop-invariant recurrent weight
    b = wslab_ref[I + H:I + H + 1, :]     # (1, H)
    who = oslab_ref[0:H, :]               # (H, O)
    bo = oslab_ref[H:H + 1, :]            # (1, O)

    # Hoisted input projection: one MXU matmul covering all T steps.
    # The flatten is a VMEM-local retile of the loaded value (no HBM relayout);
    # with B a multiple of 8 it is sublane-tile aligned.
    x2 = x_ref[...].reshape(T * B, I)
    xh = jnp.dot(x2, wih, preferred_element_type=jnp.float32) + b   # (T*B, H)

    # Serial recurrence, fully unrolled (T is small and static).  Each xh slice is a
    # full (B, H) sublane-aligned tile; per-step critical path = (B,H)@(H,H) + tanh.
    h = jnp.zeros((B, H), jnp.float32)
    for t in range(T):
        h = jnp.tanh(
            xh[t * B:(t + 1) * B, :]
            + jnp.dot(h, whh, preferred_element_type=jnp.float32)
        )

    # Final projection on the last hidden state; single store of the output.
    out_ref[...] = (
        jnp.dot(h, who, preferred_element_type=jnp.float32) + bo
    ).astype(out_ref.dtype)


def my_rnn_forward(signal, w_ih, w_hh, b, w_ho, b_o):
    """signal: (T, B, I) -> output: (B, O). Requires T >= 1."""
    T, B, I = signal.shape
    H = w_hh.shape[0]
    O = w_ho.shape[1]
    assert T >= 1, "T == 0 would leave the output block unwritten"

    # Pack the five parameter tensors into two slabs so the kernel sees
    # 3 VMEM inputs (3 DMA descriptors) instead of 6.
    wslab = jnp.concatenate([w_ih, w_hh, b], axis=0)    # (I + H + 1, H)
    oslab = jnp.concatenate([w_ho, b_o], axis=0)        # (H + 1, O)

    flops = 2 * T * B * I * H + 2 * T * B * H * H + 2 * B * H * O
    transcendentals = T * B * H
    bytes_accessed = 4 * (T * B * I + (I + H + 1) * H + (H + 1) * O + B * O)

    vmem_spec = lambda: pl.BlockSpec(memory_space=pltpu.MemorySpace.VMEM)

    return pl.pallas_call(
        rnn_kernel,
        out_shape=jax.ShapeDtypeStruct((B, O), jnp.float32),
        in_specs=[vmem_spec() for _ in range(3)],
        out_specs=vmem_spec(),
        cost_estimate=pl.CostEstimate(
            flops=flops,
            transcendentals=transcendentals,
            bytes_accessed=bytes_accessed,
        ),
    )(signal, wslab, oslab)


def my_rnn_reference(signal, w_ih, w_hh, b, w_ho, b_o):
    """Pure-JAX reference matching torch.nn.RNN + Linear semantics."""
    T, B, I = signal.shape
    H = w_hh.shape[0]

    def step(h, x_t):
        h_new = jnp.tanh(x_t @ w_ih + h @ w_hh + b)
        return h_new, None

    h0 = jnp.zeros((B, H), jnp.float32)
    h_T, _ = jax.lax.scan(step, h0, signal)
    return h_T @ w_ho + b_o


if __name__ == "__main__":
    # Small shapes consistent with the module: seq=8, batch=8 (fills the 8 sublanes),
    # input=8, hidden=32, output=16.
    T, B, I, H, O = 8, 8, 8, 32, 16

    key = jax.random.PRNGKey(0)
    ks = jax.random.split(key, 7)
    bound = 1.0 / jnp.sqrt(H)

    # Deterministic parameter init (torch default: U(-1/sqrt(H), 1/sqrt(H))).
    w_ih = jax.random.uniform(ks[0], (I, H), jnp.float32, -bound, bound)  # W_ih^T
    w_hh = jax.random.uniform(ks[1], (H, H), jnp.float32, -bound, bound)  # W_hh^T
    b_ih = jax.random.uniform(ks[2], (1, H), jnp.float32, -bound, bound)
    b_hh = jax.random.uniform(ks[3], (1, H), jnp.float32, -bound, bound)
    b = b_ih + b_hh
    w_ho = jax.random.uniform(ks[4], (H, O), jnp.float32, -bound, bound)  # W_ho^T
    b_o = jax.random.uniform(ks[5], (1, O), jnp.float32, -bound, bound)

    signal = jax.random.normal(ks[6], (T, B, I), jnp.float32)

    out = my_rnn_forward(signal, w_ih, w_hh, b, w_ho, b_o)
    out = jax.block_until_ready(out)

    ref = my_rnn_reference(signal, w_ih, w_hh, b, w_ho, b_o)
    assert out.shape == (B, O)
    assert jnp.allclose(out, ref, atol=1e-5, rtol=1e-5), "mismatch vs reference"

    print("KERNEL_OK")
</pallas_src>

<mosaic_0001>
module attributes {stable_mosaic.version = 11 : i64} {
  func.func @rnn_kernel(%arg0: memref<8x8x8xf32, #tpu.memory_space<vmem>>, %arg1: memref<41x32xf32, #tpu.memory_space<vmem>>, %arg2: memref<33x16xf32, #tpu.memory_space<vmem>>, %arg3: memref<8x16xf32, #tpu.memory_space<vmem>>) attributes {dimension_semantics = [], scalar_prefetch = 0 : i64, scratch_operands = 0 : i64, tpu.core_type = #tpu.core_type<tc>} {
    %c0 = arith.constant 0 : index
    %c0_0 = arith.constant 0 : index
    %0 = vector.load %arg1[%c0, %c0_0] : memref<41x32xf32, #tpu.memory_space<vmem>>, vector<8x32xf32>
    %c8 = arith.constant 8 : index
    %c0_1 = arith.constant 0 : index
    %1 = vector.load %arg1[%c8, %c0_1] : memref<41x32xf32, #tpu.memory_space<vmem>>, vector<32x32xf32>
    %c40 = arith.constant 40 : index
    %c0_2 = arith.constant 0 : index
    %2 = vector.load %arg1[%c40, %c0_2] : memref<41x32xf32, #tpu.memory_space<vmem>>, vector<1x32xf32>
    %c0_3 = arith.constant 0 : index
    %c0_4 = arith.constant 0 : index
    %3 = vector.load %arg2[%c0_3, %c0_4] : memref<33x16xf32, #tpu.memory_space<vmem>>, vector<32x16xf32>
    %c32 = arith.constant 32 : index
    %c0_5 = arith.constant 0 : index
    %4 = vector.load %arg2[%c32, %c0_5] : memref<33x16xf32, #tpu.memory_space<vmem>>, vector<1x16xf32>
    %c0_6 = arith.constant 0 : index
    %c0_7 = arith.constant 0 : index
    %c0_8 = arith.constant 0 : index
    %5 = vector.load %arg0[%c0_6, %c0_7, %c0_8] : memref<8x8x8xf32, #tpu.memory_space<vmem>>, vector<8x8x8xf32>
    %6 = vector.shape_cast %5 : vector<8x8x8xf32> to vector<64x8xf32>
    %cst = arith.constant dense<0.000000e+00> : vector<64x32xf32>
    %7 = tpu.matmul %6, %0, %cst {dimension_numbers = #tpu.dot_dimension_numbers<[1], [0], [0], [1], [0, 0, 1, 1], [], []>} : vector<64x8xf32>, vector<8x32xf32>, vector<64x32xf32> -> vector<64x32xf32>
    %8 = vector.broadcast %2 : vector<1x32xf32> to vector<64x32xf32>
    %9 = arith.addf %7, %8 : vector<64x32xf32>
    %cst_9 = arith.constant 0.000000e+00 : f32
    %10 = vector.broadcast %cst_9 : f32 to vector<8x32xf32>
    %11 = vector.extract_strided_slice %9 {offsets = [0, 0], sizes = [8, 32], strides = [1, 1]} : vector<64x32xf32> to vector<8x32xf32>
    %cst_10 = arith.constant dense<0.000000e+00> : vector<8x32xf32>
    %12 = tpu.matmul %10, %1, %cst_10 {dimension_numbers = #tpu.dot_dimension_numbers<[1], [0], [0], [1], [0, 0, 1, 1], [], []>} : vector<8x32xf32>, vector<32x32xf32>, vector<8x32xf32> -> vector<8x32xf32>
    %13 = arith.addf %11, %12 : vector<8x32xf32>
    %14 = math.tanh %13 : vector<8x32xf32>
    %15 = vector.extract_strided_slice %9 {offsets = [8, 0], sizes = [8, 32], strides = [1, 1]} : vector<64x32xf32> to vector<8x32xf32>
    %cst_11 = arith.constant dense<0.000000e+00> : vector<8x32xf32>
    %16 = tpu.matmul %14, %1, %cst_11 {dimension_numbers = #tpu.dot_dimension_numbers<[1], [0], [0], [1], [0, 0, 1, 1], [], []>} : vector<8x32xf32>, vector<32x32xf32>, vector<8x32xf32> -> vector<8x32xf32>
    %17 = arith.addf %15, %16 : vector<8x32xf32>
    %18 = math.tanh %17 : vector<8x32xf32>
    %19 = vector.extract_strided_slice %9 {offsets = [16, 0], sizes = [8, 32], strides = [1, 1]} : vector<64x32xf32> to vector<8x32xf32>
    %cst_12 = arith.constant dense<0.000000e+00> : vector<8x32xf32>
    %20 = tpu.matmul %18, %1, %cst_12 {dimension_numbers = #tpu.dot_dimension_numbers<[1], [0], [0], [1], [0, 0, 1, 1], [], []>} : vector<8x32xf32>, vector<32x32xf32>, vector<8x32xf32> -> vector<8x32xf32>
    %21 = arith.addf %19, %20 : vector<8x32xf32>
    %22 = math.tanh %21 : vector<8x32xf32>
    %23 = vector.extract_strided_slice %9 {offsets = [24, 0], sizes = [8, 32], strides = [1, 1]} : vector<64x32xf32> to vector<8x32xf32>
    %cst_13 = arith.constant dense<0.000000e+00> : vector<8x32xf32>
    %24 = tpu.matmul %22, %1, %cst_13 {dimension_numbers = #tpu.dot_dimension_numbers<[1], [0], [0], [1], [0, 0, 1, 1], [], []>} : vector<8x32xf32>, vector<32x32xf32>, vector<8x32xf32> -> vector<8x32xf32>
    %25 = arith.addf %23, %24 : vector<8x32xf32>
    %26 = math.tanh %25 : vector<8x32xf32>
    %27 = vector.extract_strided_slice %9 {offsets = [32, 0], sizes = [8, 32], strides = [1, 1]} : vector<64x32xf32> to vector<8x32xf32>
    %cst_14 = arith.constant dense<0.000000e+00> : vector<8x32xf32>
    %28 = tpu.matmul %26, %1, %cst_14 {dimension_numbers = #tpu.dot_dimension_numbers<[1], [0], [0], [1], [0, 0, 1, 1], [], []>} : vector<8x32xf32>, vector<32x32xf32>, vector<8x32xf32> -> vector<8x32xf32>
    %29 = arith.addf %27, %28 : vector<8x32xf32>
    %30 = math.tanh %29 : vector<8x32xf32>
    %31 = vector.extract_strided_slice %9 {offsets = [40, 0], sizes = [8, 32], strides = [1, 1]} : vector<64x32xf32> to vector<8x32xf32>
    %cst_15 = arith.constant dense<0.000000e+00> : vector<8x32xf32>
    %32 = tpu.matmul %30, %1, %cst_15 {dimension_numbers = #tpu.dot_dimension_numbers<[1], [0], [0], [1], [0, 0, 1, 1], [], []>} : vector<8x32xf32>, vector<32x32xf32>, vector<8x32xf32> -> vector<8x32xf32>
    %33 = arith.addf %31, %32 : vector<8x32xf32>
    %34 = math.tanh %33 : vector<8x32xf32>
    %35 = vector.extract_strided_slice %9 {offsets = [48, 0], sizes = [8, 32], strides = [1, 1]} : vector<64x32xf32> to vector<8x32xf32>
    %cst_16 = arith.constant dense<0.000000e+00> : vector<8x32xf32>
    %36 = tpu.matmul %34, %1, %cst_16 {dimension_numbers = #tpu.dot_dimension_numbers<[1], [0], [0], [1], [0, 0, 1, 1], [], []>} : vector<8x32xf32>, vector<32x32xf32>, vector<8x32xf32> -> vector<8x32xf32>
    %37 = arith.addf %35, %36 : vector<8x32xf32>
    %38 = math.tanh %37 : vector<8x32xf32>
    %39 = vector.extract_strided_slice %9 {offsets = [56, 0], sizes = [8, 32], strides = [1, 1]} : vector<64x32xf32> to vector<8x32xf32>
    %cst_17 = arith.constant dense<0.000000e+00> : vector<8x32xf32>
    %40 = tpu.matmul %38, %1, %cst_17 {dimension_numbers = #tpu.dot_dimension_numbers<[1], [0], [0], [1], [0, 0, 1, 1], [], []>} : vector<8x32xf32>, vector<32x32xf32>, vector<8x32xf32> -> vector<8x32xf32>
    %41 = arith.addf %39, %40 : vector<8x32xf32>
    %42 = math.tanh %41 : vector<8x32xf32>
    %cst_18 = arith.constant dense<0.000000e+00> : vector<8x16xf32>
    %43 = tpu.matmul %42, %3, %cst_18 {dimension_numbers = #tpu.dot_dimension_numbers<[1], [0], [0], [1], [0, 0, 1, 1], [], []>} : vector<8x32xf32>, vector<32x16xf32>, vector<8x16xf32> -> vector<8x16xf32>
    %44 = vector.broadcast %4 : vector<1x16xf32> to vector<8x16xf32>
    %45 = arith.addf %43, %44 : vector<8x16xf32>
    %c0_19 = arith.constant 0 : index
    %c0_20 = arith.constant 0 : index
    %46 = vector.load %arg3[%c0_19, %c0_20] : memref<8x16xf32, #tpu.memory_space<vmem>>, vector<8x16xf32>
    tpu.vector_store %arg3[%c0_19, %c0_20], %45 {strides = array<i32>} : memref<8x16xf32, #tpu.memory_space<vmem>>, vector<8x16xf32>,
    return
  }
}

</mosaic_0001>

<bundles_post_ra>
// kernel: tpu_custom_call.1
= control target key start
LH: loop header
LB: loop body
LE: loop exit
PB: predicated region body
PF: predicated region fallthrough
CT: control target
= control target key end

     0   :  { %vm35_vm0 = vcmask 64512   ;;  %s516_s0 = inlined_call_operand.vmem [shape: f32[8,8,8], index: 0, kind: input, shape index: {}]   ;;  %s517_s1 = inlined_call_operand.vmem [shape: f32[41,32], index: 1, kind: input, shape index: {}]   ;;  %s518_s2 = inlined_call_operand.vmem [shape: f32[33,16], index: 2, kind: input, shape index: {}]   ;;  %s519_s3 = inlined_call_operand.hbm [shape: f32[8,16], index: 3, kind: output, shape index: {}]  }
   0x1   :  { %v15_v0 = vld [vmem:[%s517_s1] sm:$0xff]  ;;  %v31_v1 = vld [vmem:[%s516_s0 + $0x28] sm:$0xff]  ;;  %v18_v4 = vld [vmem:[%s517_s1 + $0x18] sm:$0xff] }
   0x2   :  { %v19_v2 = vld [vmem:[%s517_s1 + $0x20] sm:$0xff]  ;;  %360 = vmatpush.msra.mxu1 %v15_v0  ;;  %75 = vmatpush.msra.mxu0 %v15_v0 }
   0x3   :  { %v26_v3 = vld [vmem:[%s516_s0] sm:$0xff]  ;;  %349 = vmatmul.msk.f32.vlgmr.msra.gmra.mxu1 %vm35_vm0, %v31_v1  ;;  %361 = vmatpush.msra.mxu2 %v15_v0 }
   0x4   :  { %344 = vmatmul.msk.f32.vlgmr.msra.gmra.mxu0 %vm35_vm0, %v26_v3  ;;  %117 = vmatpush.msrb.mxu1 %v19_v2 }
   0x5   :  { %8 = vsyncpa [#allocation3], 0  ;;  %v17_v5 = vld [vmem:[%s517_s1 + $0x10] sm:$0xff]  ;;  %142 = vmatpush.msrb.mxu2 %v19_v2  ;;  %167 = vmatpush.msra.mxu3 %v19_v2  ;;  %v16_v6 = vld [vmem:[%s517_s1 + $0x8] sm:$0xff]  ;;  %v408_v7 = vmov 0.0   ;;  %vm101_vm1 = vcmask 261120  }
   0x6   :  { %118 = vmatpush.msrb.mxu1 %v18_v4  ;;  %v32_v8 = vld [vmem:[%s516_s0 + $0x30] sm:$0xff]  ;;  %v33_v9 = vld [vmem:[%s516_s0 + $0x38] sm:$0xff]  ;;  %v27_v10 = vld [vmem:[%s516_s0 + $0x8] sm:$0xff]  ;;  %s409_s21 = smov [#allocation2]   ;;  %s335_s25 = sshll.u32 %s519_s3, 4  ;;  %vm326_vm2 = vcmask 130048   ;;  %s336_s25 = int_to_ptr.hbm [resolvable:$true] %s335_s25 }
   0x7   :  { %143 = vmatpush.msrb.mxu2 %v18_v4  ;;  %168 = vmatpush.msra.mxu3 %v18_v4  ;;  %v468_v13 = vld [vmem:[%s517_s1 + $0x28] ss:$0 sm:$0xff]  ;;  %v28_v18 = vld [vmem:[%s516_s0 + $0x10] sm:$0xff]  ;;  %v29_v26 = vld [vmem:[%s516_s0 + $0x18] sm:$0xff]  ;;  %s333_s22 = sshll.u32 %s409_s21, 4  ;;  %s334_s22 = int_to_ptr.vmem [resolvable:$true] %s333_s22 }
   0x8   :  { %119 = vmatpush.msrb.mxu1 %v17_v5  ;;  %350 = vmatmul.msk.f32.vlgmr.msra.gmra.mxu2 %vm35_vm0, %v32_v8  ;;  %v30_v32 = vld [vmem:[%s516_s0 + $0x20] sm:$0xff]  ;;  %v24_v51 = vld [vmem:[%s518_s2 + $0x18] sm:$0xff]  ;;  %v23_v52 = vld [vmem:[%s518_s2 + $0x10] sm:$0xff] }
   0x9   :  { %144 = vmatpush.msrb.mxu2 %v17_v5  ;;  %169 = vmatpush.msra.mxu3 %v17_v5  ;;  %v22_v53 = vld [vmem:[%s518_s2 + $0x8] sm:$0xff]  ;;  %v21_v54 = vld [vmem:[%s518_s2] sm:$0xff] }
   0xa   :  { %120 = vmatpush.msrb.mxu1 %v16_v6  ;;  %v365_v59 = vld [vmem:[%s518_s2 + $0x20] ss:$0 sm:$0xff] }
   0xb   :  { %121 = vmatmul.f32.vlgmr.msrb.gmra.mxu1 %v408_v7  ;;  %145 = vmatpush.msrb.mxu2 %v16_v6 }
   0xc   :  { %170 = vmatpush.msra.mxu3 %v16_v6  ;;  %192 = vmatpush.msra.mxu1 %v19_v2 }
   0xd   :  { %217 = vmatpush.msra.mxu2 %v19_v2  ;;  %345 = vmatmul.msk.f32.gmra.mxu0 %vm35_vm0, %v27_v10 }
   0xe   :  { %242 = vmatpush.msrb.mxu3 %v19_v2  ;;  %193 = vmatpush.msra.mxu1 %v18_v4 }
   0xf   :  { %218 = vmatpush.msra.mxu2 %v18_v4 }
  0x10   :  { %243 = vmatpush.msrb.mxu3 %v18_v4  ;;  %194 = vmatpush.msra.mxu1 %v17_v5 }
  0x11   :  { %219 = vmatpush.msra.mxu2 %v17_v5 }
  0x12   :  { %244 = vmatpush.msrb.mxu3 %v17_v5  ;;  %195 = vmatpush.msra.mxu1 %v16_v6 }
  0x13   :  { %220 = vmatpush.msra.mxu2 %v16_v6 }
  0x14   :  { %245 = vmatpush.msrb.mxu3 %v16_v6  ;;  %267 = vmatpush.msrb.mxu1 %v19_v2 }
  0x15   :  { %351 = vmatmul.msk.f32.gmra.mxu2 %vm35_vm0, %v33_v9  ;;  %346 = vmatmul.msk.f32.gmra.mxu0 %vm35_vm0, %v28_v18 }
  0x16   :  { %268 = vmatpush.msrb.mxu1 %v18_v4 }
  0x18   :  { %269 = vmatpush.msrb.mxu1 %v17_v5 }
  0x1a   :  { %270 = vmatpush.msrb.mxu1 %v16_v6 }
  0x1d   :  { %347 = vmatmul.msk.f32.gmra.mxu0 %vm35_vm0, %v29_v26 }
  0x25   :  { %348 = vmatmul.msk.f32.gmra.mxu0 %vm35_vm0, %v30_v32 }
  0x80   :  { %v92_v11 = vpop.f32.mrf.mxu1 }
  0x81   :  { %v77_v12 = vpop.f32.mrf.mxu0  ;;  %v93_v43 = vadd.f32 %v468_v13, %v92_v11 }
  0x82   :  { %v78_v14 = vadd.f32 %v468_v13, %v77_v12 }
  0x88   :  { %v122_v15 = vpop.f32.mrf.mxu1 }
  0x89   :  { %v125_v16 = vadd.f32 %v122_v15, %v78_v14 }
  0x8a   :  { %v80_v21 = vpop.f32.mrf.mxu0 }
  0x8b   :  { %366 = vtanh.f32 %v125_v16  ;;  %v95_v19 = vpop.f32.mrf.mxu2  ;;  %v81_v22 = vadd.f32 %v468_v13, %v80_v21 }
  0x8c   :  { %v96_v47 = vadd.f32 %v468_v13, %v95_v19 }
  0x91   :  { %v367_v17 = vpop.eup %366 }
  0x92   :  { %352 = vmatmul.msk.f32.vlgmr.msrb.gmra.mxu2 %vm101_vm1, %v367_v17  ;;  %v83_v27 = vpop.f32.mrf.mxu0 }
  0x93   :  { %292 = vmatpush.msrb.mxu2 %v19_v2  ;;  %v84_v28 = vadd.f32 %v468_v13, %v83_v27 }
  0x95   :  { %293 = vmatpush.msrb.mxu2 %v18_v4 }
  0x97   :  { %294 = vmatpush.msrb.mxu2 %v17_v5 }
  0x98   :  { %v98_v20 = vpop.f32.mrf.mxu2 }
  0x99   :  { %295 = vmatpush.msrb.mxu2 %v16_v6  ;;  %v99_v55 = vadd.f32 %v468_v13, %v98_v20 }
  0x9a   :  { %v86_v33 = vpop.f32.mrf.mxu0 }
  0x9b   :  { %v87_v34 = vadd.f32 %v468_v13, %v86_v33 }
  0xa2   :  { %v89_v38 = vpop.f32.mrf.mxu0 }
  0xa3   :  { %v90_v39 = vadd.f32 %v468_v13, %v89_v38 }
 0x115   :  { %v147_v23 = vpop.f32.mrf.mxu2 }
 0x116   :  { %v150_v24 = vadd.f32 %v147_v23, %v81_v22 }
 0x118   :  { %368 = vtanh.f32 %v150_v24 }
 0x11e   :  { %v369_v25 = vpop.eup %368 }
 0x11f   :  { %353 = vmatmul.msk.f32.vlgmr.msra.gmra.mxu3 %vm101_vm1, %v369_v25 }
 0x120   :  { %318 = vmatpush.msra.mxu3 %v24_v51 }
 0x122   :  { %319 = vmatpush.msra.mxu3 %v23_v52 }
 0x124   :  { %320 = vmatpush.msra.mxu3 %v22_v53 }
 0x126   :  { %321 = vmatpush.msra.mxu3 %v21_v54 }
 0x1a2   :  { %v172_v29 = vpop.f32.mrf.mxu3 }
 0x1a3   :  { %v175_v30 = vadd.f32 %v172_v29, %v84_v28 }
 0x1a5   :  { %370 = vtanh.f32 %v175_v30 }
 0x1ab   :  { %v371_v31 = vpop.eup %370 }
 0x1ac   :  { %354 = vmatmul.msk.f32.vlgmr.msra.gmra.mxu1 %vm101_vm1, %v371_v31 }
 0x229   :  { %v197_v35 = vpop.f32.mrf.mxu1 }
 0x22a   :  { %v200_v36 = vadd.f32 %v197_v35, %v87_v34 }
 0x22c   :  { %372 = vtanh.f32 %v200_v36 }
 0x232   :  { %v373_v37 = vpop.eup %372 }
 0x233   :  { %355 = vmatmul.msk.f32.vlgmr.msra.gmra.mxu2 %vm101_vm1, %v373_v37 }
 0x2b6   :  { %v222_v40 = vpop.f32.mrf.mxu2 }
 0x2b7   :  { %v225_v41 = vadd.f32 %v222_v40, %v90_v39 }
 0x2b9   :  { %374 = vtanh.f32 %v225_v41 }
 0x2bf   :  { %v375_v42 = vpop.eup %374 }
 0x2c0   :  { %356 = vmatmul.msk.f32.vlgmr.msrb.gmra.mxu3 %vm101_vm1, %v375_v42 }
 0x343   :  { %v247_v44 = vpop.f32.mrf.mxu3 }
 0x344   :  { %v250_v45 = vadd.f32 %v247_v44, %v93_v43 }
 0x346   :  { %376 = vtanh.f32 %v250_v45 }
 0x34c   :  { %v377_v46 = vpop.eup %376 }
 0x34d   :  { %357 = vmatmul.msk.f32.vlgmr.msrb.gmra.mxu1 %vm101_vm1, %v377_v46 }
 0x3ca   :  { %v272_v48 = vpop.f32.mrf.mxu1 }
 0x3cb   :  { %v275_v49 = vadd.f32 %v272_v48, %v96_v47 }
 0x3cd   :  { %378 = vtanh.f32 %v275_v49 }
 0x3d3   :  { %v379_v50 = vpop.eup %378 }
 0x3d4   :  { %358 = vmatmul.msk.f32.vlgmr.msrb.gmra.mxu2 %vm101_vm1, %v379_v50 }
 0x457   :  { %v297_v56 = vpop.f32.mrf.mxu2 }
 0x458   :  { %v300_v57 = vadd.f32 %v297_v56, %v99_v55 }
 0x45a   :  { %380 = vtanh.f32 %v300_v57 }
 0x460   :  { %v381_v58 = vpop.eup %380 }
 0x461   :  { %359 = vmatmul.msk.f32.vlgmr.msra.gmra.mxu3 %vm101_vm1, %v381_v58 }
 0x4e4   :  { %v323_v60 = vpop.f32.mrf.mxu3 }
 0x4e5   :  { %v324_v61 = vadd.f32 %v365_v59, %v323_v60 }
 0x4e7   :  { %327 = vst.msk [vmem:[#allocation2] sm:$0xff] %vm326_vm2, %v324_v61 }
 0x4e8   :  { %338 = dma.vmem_to_hbm [thread:$0]  %s334_s22, 128, %s336_s25, [#allocation3]  }
 0x4e9   :  { %406 = dma.done.wait [#allocation3], 128  }
 0x4ea   :  { %407 = vsyncadd [#allocation3], 4294967168 }
 0x4eb   :  { %343 = vsyncpa [#allocation3], 1 }

</bundles_post_ra>
